<compile_context>
chip_gen: v7x
topology: tpu7x:2x2x1
jax: 0.10.0
libtpu: 0.0.40
codegen_flags: <defaults>
</compile_context>

<pallas_src>
import jax
import jax.numpy as jnp
from jax.experimental import pallas as pl
from jax.experimental.pallas import tpu as pltpu

IN_F = 512
HID_F = 256
OUT_F = 40
OUT_PAD = 128  # lane-dense padded output width


def _mlp_head_kernel(x_ref, w1_ref, b1_ref, w2_ref, b2_ref, o_ref):
    # fc1: bf16 operands on the MXU, f32 accumulation.
    h = jnp.dot(x_ref[...], w1_ref[...], preferred_element_type=jnp.float32)
    # Bias + ReLU stay in f32 (v5e has no bf16 VALU path).
    h = jnp.maximum(h + b1_ref[...], 0.0)
    # (dropout is identity in eval mode)
    # fc2: cast activations to bf16 for the MXU, accumulate f32, lane-dense store.
    out = jnp.dot(h.astype(jnp.bfloat16), w2_ref[...],
                  preferred_element_type=jnp.float32)
    o_ref[...] = (out + b2_ref[...]).astype(o_ref.dtype)


def classifier1_forward(x, w1, b1, w2, b2, *, b_tile=None):
    """x: (B, C, D, H, W) float32.  Returns (B, 40) float32.

    w1: (512, 256), b1: (256,), w2: (256, 40), b2: (40,)   (stored as (in, out)).
    """
    # Glue: strided subsample + flatten (matches x[:, :, ::8, ::8, ::8].view(B, -1)).
    v = x[:, :, ::8, ::8, ::8]
    B = v.shape[0]
    flat = v.reshape(B, -1)
    assert flat.shape[1] == IN_F, f"flattened dim must be {IN_F}, got {flat.shape[1]}"

    # bf16 MXU operands; halves the dominant HBM traffic (weights + activations).
    flat_bf16 = flat.astype(jnp.bfloat16)
    w1_bf16 = w1.astype(jnp.bfloat16)
    # Zero-pad fc2 weights/bias to a full 128-lane output group (inert extra cols).
    w2_pad = jnp.zeros((HID_F, OUT_PAD), jnp.bfloat16).at[:, :OUT_F].set(
        w2.astype(jnp.bfloat16))
    b2_pad = jnp.zeros((1, OUT_PAD), jnp.float32).at[:, :OUT_F].set(
        b2.astype(jnp.float32))
    b1_2d = b1.reshape(1, HID_F).astype(jnp.float32)

    # Batch tiling: multiple of 16 (clean bf16 sublane packing), capped so the
    # per-step working set stays tiny even on v7x's 64 MiB VMEM.
    if b_tile is None:
        b_tile = min(256, -(-B // 16) * 16)
    b_pad = -(-B // b_tile) * b_tile
    if b_pad != B:
        flat_bf16 = jnp.pad(flat_bf16, ((0, b_pad - B), (0, 0)))
    grid = (b_pad // b_tile,)

    flops = 2 * b_pad * (IN_F * HID_F + HID_F * OUT_PAD)
    bytes_accessed = (flat_bf16.size * 2 + w1_bf16.size * 2 + w2_pad.size * 2
                      + b1_2d.size * 4 + b2_pad.size * 4 + b_pad * OUT_PAD * 4)

    out = pl.pallas_call(
        _mlp_head_kernel,
        out_shape=jax.ShapeDtypeStruct((b_pad, OUT_PAD), jnp.float32),
        grid=grid,
        in_specs=[
            pl.BlockSpec((b_tile, IN_F), lambda i: (i, 0)),     # activations (tiled)
            pl.BlockSpec((IN_F, HID_F), lambda i: (0, 0)),      # w1 (VMEM-resident)
            pl.BlockSpec((1, HID_F), lambda i: (0, 0)),         # b1
            pl.BlockSpec((HID_F, OUT_PAD), lambda i: (0, 0)),   # w2 (padded, resident)
            pl.BlockSpec((1, OUT_PAD), lambda i: (0, 0)),       # b2 (padded)
        ],
        out_specs=pl.BlockSpec((b_tile, OUT_PAD), lambda i: (i, 0)),
        compiler_params=pltpu.CompilerParams(
            dimension_semantics=("parallel",),
            vmem_limit_bytes=32 * 1024 * 1024,
        ),
        cost_estimate=pl.CostEstimate(
            flops=flops, transcendentals=0, bytes_accessed=bytes_accessed),
    )(flat_bf16, w1_bf16, b1_2d, w2_pad, b2_pad)

    return out[:B, :OUT_F]


def init_params(key):
    """Deterministic param init matching nn.Linear shapes (stored as (in, out))."""
    k1, k2, k3, k4 = jax.random.split(key, 4)
    lim1 = 1.0 / jnp.sqrt(512.0)
    lim2 = 1.0 / jnp.sqrt(256.0)
    w1 = jax.random.uniform(k1, (512, 256), jnp.float32, -lim1, lim1)
    b1 = jax.random.uniform(k2, (256,), jnp.float32, -lim1, lim1)
    w2 = jax.random.uniform(k3, (256, 40), jnp.float32, -lim2, lim2)
    b2 = jax.random.uniform(k4, (40,), jnp.float32, -lim2, lim2)
    return w1, b1, w2, b2


if __name__ == "__main__":
    key = jax.random.PRNGKey(0)
    kx, kp = jax.random.split(key)

    # Input: (B=2, C=64, D=16, H=16, W=16).  Stride-8 subsample -> (2, 64, 2, 2, 2)
    # -> flatten -> (2, 512), matching the Linear(512, 256) head.
    x = jax.random.normal(kx, (2, 64, 16, 16, 16), dtype=jnp.float32)
    w1, b1, w2, b2 = init_params(kp)

    out = classifier1_forward(x, w1, b1, w2, b2)
    out = jax.block_until_ready(out)
    assert out.shape == (2, 40)

    # Reference with the same bf16 operand / f32 accumulation recipe.
    v = x[:, :, ::8, ::8, ::8].reshape(x.shape[0], -1)
    h_ref = jnp.maximum(
        jnp.dot(v.astype(jnp.bfloat16), w1.astype(jnp.bfloat16),
                preferred_element_type=jnp.float32) + b1, 0.0)
    ref = jnp.dot(h_ref.astype(jnp.bfloat16), w2.astype(jnp.bfloat16),
                  preferred_element_type=jnp.float32) + b2
    assert jnp.allclose(out, ref, atol=1e-2, rtol=1e-2)

    # Also stay reasonably close to the full-f32 math (bf16 weight quantization).
    ref_f32 = jnp.maximum(v @ w1 + b1, 0.0) @ w2 + b2
    assert jnp.allclose(out, ref_f32, atol=5e-2, rtol=5e-2)

    print("KERNEL_OK")
</pallas_src>

<mosaic_0001>
module attributes {stable_mosaic.version = 11 : i64} {
  func.func @_mlp_head_kernel(%arg0: i32, %arg1: memref<16x512xbf16, #tpu.memory_space<vmem>>, %arg2: memref<512x256xbf16, #tpu.memory_space<vmem>>, %arg3: memref<1x256xf32, #tpu.memory_space<vmem>>, %arg4: memref<256x128xbf16, #tpu.memory_space<vmem>>, %arg5: memref<1x128xf32, #tpu.memory_space<vmem>>, %arg6: memref<16x128xf32, #tpu.memory_space<vmem>>) attributes {dimension_semantics = [#tpu.dimension_semantics<parallel>], iteration_bounds = array<i64: 1>, scalar_prefetch = 0 : i64, scratch_operands = 0 : i64, tpu.core_type = #tpu.core_type<tc>, window_params = [{transform_indices = @transform_0, window_bounds = array<i64: 16, 512>}, {pipeline_mode = #tpu.pipeline_mode<synchronous>, transform_indices = @transform_1, window_bounds = array<i64: 512, 256>}, {pipeline_mode = #tpu.pipeline_mode<synchronous>, transform_indices = @transform_2, window_bounds = array<i64: 1, 256>}, {pipeline_mode = #tpu.pipeline_mode<synchronous>, transform_indices = @transform_3, window_bounds = array<i64: 256, 128>}, {pipeline_mode = #tpu.pipeline_mode<synchronous>, transform_indices = @transform_4, window_bounds = array<i64: 1, 128>}, {transform_indices = @transform_5, window_bounds = array<i64: 16, 128>}]} {
    %c0 = arith.constant 0 : index
    %c0_0 = arith.constant 0 : index
    %0 = vector.load %arg1[%c0, %c0_0] : memref<16x512xbf16, #tpu.memory_space<vmem>>, vector<16x512xbf16>
    %c0_1 = arith.constant 0 : index
    %c0_2 = arith.constant 0 : index
    %1 = vector.load %arg2[%c0_1, %c0_2] : memref<512x256xbf16, #tpu.memory_space<vmem>>, vector<512x256xbf16>
    %cst = arith.constant dense<0.000000e+00> : vector<16x256xf32>
    %2 = tpu.matmul %0, %1, %cst {dimension_numbers = #tpu.dot_dimension_numbers<[1], [0], [0], [1], [0, 0, 1, 1], [], []>} : vector<16x512xbf16>, vector<512x256xbf16>, vector<16x256xf32> -> vector<16x256xf32>
    %c0_3 = arith.constant 0 : index
    %c0_4 = arith.constant 0 : index
    %3 = vector.load %arg3[%c0_3, %c0_4] : memref<1x256xf32, #tpu.memory_space<vmem>>, vector<1x256xf32>
    %4 = vector.broadcast %3 : vector<1x256xf32> to vector<16x256xf32>
    %5 = arith.addf %2, %4 : vector<16x256xf32>
    %cst_5 = arith.constant 0.000000e+00 : f32
    %6 = vector.broadcast %cst_5 : f32 to vector<16x256xf32>
    %7 = arith.maximumf %5, %6 : vector<16x256xf32>
    %8 = arith.truncf %7 : vector<16x256xf32> to vector<16x256xbf16>
    %c0_6 = arith.constant 0 : index
    %c0_7 = arith.constant 0 : index
    %9 = vector.load %arg4[%c0_6, %c0_7] : memref<256x128xbf16, #tpu.memory_space<vmem>>, vector<256x128xbf16>
    %cst_8 = arith.constant dense<0.000000e+00> : vector<16x128xf32>
    %10 = tpu.matmul %8, %9, %cst_8 {dimension_numbers = #tpu.dot_dimension_numbers<[1], [0], [0], [1], [0, 0, 1, 1], [], []>} : vector<16x256xbf16>, vector<256x128xbf16>, vector<16x128xf32> -> vector<16x128xf32>
    %c0_9 = arith.constant 0 : index
    %c0_10 = arith.constant 0 : index
    %11 = vector.load %arg5[%c0_9, %c0_10] : memref<1x128xf32, #tpu.memory_space<vmem>>, vector<1x128xf32>
    %12 = vector.broadcast %11 : vector<1x128xf32> to vector<16x128xf32>
    %13 = arith.addf %10, %12 : vector<16x128xf32>
    %c0_11 = arith.constant 0 : index
    %c0_12 = arith.constant 0 : index
    %14 = vector.load %arg6[%c0_11, %c0_12] : memref<16x128xf32, #tpu.memory_space<vmem>>, vector<16x128xf32>
    tpu.vector_store %arg6[%c0_11, %c0_12], %13 {strides = array<i32>} : memref<16x128xf32, #tpu.memory_space<vmem>>, vector<16x128xf32>,
    return
  }
  func.func @transform_0(%arg0: i32) -> (i32, i32) {
    %c0_i32 = arith.constant 0 : i32
    %c0_i32_0 = arith.constant 0 : i32
    return %arg0, %c0_i32 : i32, i32
  }
  func.func @transform_1(%arg0: i32) -> (i32, i32) {
    %c0_i32 = arith.constant 0 : i32
    %c0_i32_0 = arith.constant 0 : i32
    %c0_i32_1 = arith.constant 0 : i32
    return %c0_i32, %c0_i32_0 : i32, i32
  }
  func.func @transform_2(%arg0: i32) -> (i32, i32) {
    %c0_i32 = arith.constant 0 : i32
    %c0_i32_0 = arith.constant 0 : i32
    %c0_i32_1 = arith.constant 0 : i32
    return %c0_i32, %c0_i32_0 : i32, i32
  }
  func.func @transform_3(%arg0: i32) -> (i32, i32) {
    %c0_i32 = arith.constant 0 : i32
    %c0_i32_0 = arith.constant 0 : i32
    %c0_i32_1 = arith.constant 0 : i32
    return %c0_i32, %c0_i32_0 : i32, i32
  }
  func.func @transform_4(%arg0: i32) -> (i32, i32) {
    %c0_i32 = arith.constant 0 : i32
    %c0_i32_0 = arith.constant 0 : i32
    %c0_i32_1 = arith.constant 0 : i32
    return %c0_i32, %c0_i32_0 : i32, i32
  }
  func.func @transform_5(%arg0: i32) -> (i32, i32) {
    %c0_i32 = arith.constant 0 : i32
    %c0_i32_0 = arith.constant 0 : i32
    return %arg0, %c0_i32 : i32, i32
  }
}

</mosaic_0001>

<bundles_post_ra>
// kernel: tpu_custom_call.1
= control target key start
LH: loop header
LB: loop body
LE: loop exit
PB: predicated region body
PF: predicated region fallthrough
CT: control target
= control target key end

     0   :  { %10 = vsyncpa [#allocation3], 0  ;;  %s1208_s0 = inlined_call_operand.hbm [shape: bf16[16,512], index: 0, kind: input, shape index: {}]   ;;  %s1209_s1 = inlined_call_operand.hbm [shape: bf16[512,256], index: 1, kind: input, shape index: {}]   ;;  %s1210_s2 = inlined_call_operand.vmem [shape: f32[1,256], index: 2, kind: input, shape index: {}]   ;;  %s1211_s3 = inlined_call_operand.hbm [shape: bf16[256,128], index: 3, kind: input, shape index: {}]   ;;  %s1212_s4 = inlined_call_operand.vmem [shape: f32[1,128], index: 4, kind: input, shape index: {}]   ;;  %s1213_s5 = inlined_call_operand.hbm [shape: f32[16,128], index: 5, kind: output, shape index: {}]  }
   0x1   :  { %11 = vsyncpa [#allocation6], 0 }
   0x2   :  { %12 = vsyncpa [#allocation4], 0  ;;  %s1108_s18 = smov [#allocation5]   ;;  %s1014_s22 = scalar_lea.hbm %s1209_s1, 8192 }
   0x3   :  { %s30_s19 = sshll.u32 %s1108_s18, 4  ;;  %p1015_p0 = scmp.ne.s32.totalorder %s1209_s1, %s1014_s22  ;;  %s31_s19 = int_to_ptr.vmem [resolvable:$true] %s30_s19 }
   0x4   :  { %p1018_p1 = scmp.lt.u32.totalorder %s1014_s22, %s1209_s1 }
   0x6   :  { %p1020_p2 = pnand %p1018_p1, %p1015_p0 }
   0x8   :  { %1023 = shalt.err (!%p1020_p2)
}
   0x9   :  { %s1024_s27 = scalar_lea.vmem %s31_s19, 8192  ;;  %p1029_p4 = scmp.lt.s32.totalorder %s31_s19, %s31_s19 }
   0xa   :  { %p1025_p3 = scmp.ne.s32.totalorder %s31_s19, %s1024_s27  ;;  %p1030_p5 = scmp.lt.s32.totalorder %s1024_s27, %s1024_s27 }
   0xc   :  { %p1031_p6 = por %p1030_p5, %p1029_p4 }
   0xe   :  { %p1032_p7 = pnand %p1031_p6, %p1025_p3 }
  0x10   :  { %1035 = shalt.err (!%p1032_p7)
}
  0x11   :  { %s1109_s28 = smov 128   ;;  %s1110_s29 = smov 8  }
  0x12   :  { %36 = dma.hbm_to_vmem [thread:$0]  %s1209_s1, 8192, %s31_s19, [#allocation6], %s1109_s28, %s1109_s28, %s1110_s29  }
  0x13   :  { %s1111_s7 = smov [#allocation2]   ;;  %s1036_s11 = scalar_lea.hbm %s1208_s0, 512 }
  0x14   :  { %s18_s8 = sshll.u32 %s1111_s7, 4  ;;  %p1037_p8 = scmp.ne.s32.totalorder %s1208_s0, %s1036_s11  ;;  %s19_s8 = int_to_ptr.vmem [resolvable:$true] %s18_s8 }
  0x15   :  { %p1040_p9 = scmp.lt.u32.totalorder %s1036_s11, %s1208_s0 }
  0x17   :  { %p1042_p10 = pnand %p1040_p9, %p1037_p8 }
  0x19   :  { %1045 = shalt.err (!%p1042_p10)
}
  0x1a   :  { %s1046_s16 = scalar_lea.vmem %s19_s8, 512  ;;  %p1051_p12 = scmp.lt.s32.totalorder %s19_s8, %s19_s8 }
  0x1b   :  { %p1047_p11 = scmp.ne.s32.totalorder %s19_s8, %s1046_s16  ;;  %p1052_p13 = scmp.lt.s32.totalorder %s1046_s16, %s1046_s16 }
  0x1d   :  { %p1053_p0 = por %p1052_p13, %p1051_p12 }
  0x1f   :  { %p1054_p1 = pnand %p1053_p0, %p1047_p11 }
  0x21   :  { %1057 = shalt.err (!%p1054_p1)
}
  0x22   :  { %s1112_s1 = smov 256   ;;  %s1113_s17 = smov 16  }
  0x23   :  { %24 = dma.hbm_to_vmem [thread:$0]  %s1208_s0, 512, %s19_s8, [#allocation3], %s1112_s1, %s1112_s1, %s1113_s17  }
  0x24   :  { %s1114_s20 = smov [#allocation7]   ;;  %s1058_s24 = scalar_lea.hbm %s1211_s3, 2048 }
  0x25   :  { %s44_s21 = sshll.u32 %s1114_s20, 4  ;;  %p1059_p2 = scmp.ne.s32.totalorder %s1211_s3, %s1058_s24  ;;  %s45_s21 = int_to_ptr.vmem [resolvable:$true] %s44_s21 }
  0x26   :  { %p1062_p3 = scmp.lt.u32.totalorder %s1058_s24, %s1211_s3 }
  0x28   :  { %p1064_p4 = pnand %p1062_p3, %p1059_p2 }
  0x2a   :  { %1067 = shalt.err (!%p1064_p4)
}
  0x2b   :  { %s1068_s6 = scalar_lea.vmem %s45_s21, 2048  ;;  %p1073_p6 = scmp.lt.s32.totalorder %s45_s21, %s45_s21 }
  0x2c   :  { %p1069_p5 = scmp.ne.s32.totalorder %s45_s21, %s1068_s6  ;;  %p1074_p7 = scmp.lt.s32.totalorder %s1068_s6, %s1068_s6 }
  0x2e   :  { %p1075_p8 = por %p1074_p7, %p1073_p6 }
  0x30   :  { %p1076_p9 = pnand %p1075_p8, %p1069_p5 }
  0x32   :  { %1079 = shalt.err (!%p1076_p9)
}
  0x33   :  { %s1115_s0 = smov 64   ;;  %s1116_s7 = smov 4  }
  0x34   :  { %50 = dma.hbm_to_vmem [thread:$0]  %s1211_s3, 2048, %s45_s21, [#allocation6], %s1115_s0, %s1115_s0, %s1116_s7  }
  0x35   :  { %1102 = dma.done.wait [#allocation3], 512  }
  0x36   :  { %1103 = vsyncadd [#allocation3], 4294966784 }
  0x37   :  { %1104 = dma.done.wait [#allocation6], 10240  }
  0x38   :  { %1105 = vsyncadd [#allocation6], 4294957056  ;;  %v896_v0 = vld [vmem:[#allocation5 + $0x4] ss:$8 sps:$4 sm:$0xff]   ;;  %v900_v2 = vld [vmem:[#allocation5] ss:$8 sps:$4 sm:$0xff]  }
  0x39   :  { %v898_v1 = vld [vmem:[#allocation5 + $0x104] ss:$8 sps:$4 sm:$0xff]   ;;  %483 = vmatprep.subr.bf16.mxu1 %v896_v0  ;;  %v901_v3 = vld [vmem:[#allocation5 + $0x100] ss:$8 sps:$4 sm:$0xff]   ;;  %v902_v4 = vld [vmem:[#allocation5 + $0x14] ss:$8 sps:$4 sm:$0xff]  }
  0x3a   :  { %526 = vmatprep.subr.bf16.mxu0 %v898_v1  ;;  %484 = vmatpush1.bf16.msra.mxu1 %v900_v2  ;;  %v904_v5 = vld [vmem:[#allocation5 + $0x114] ss:$8 sps:$4 sm:$0xff]   ;;  %v906_v6 = vld [vmem:[#allocation5 + $0x10] ss:$8 sps:$4 sm:$0xff]   ;;  %v908_v8 = vld [vmem:[#allocation5 + $0x24] ss:$8 sps:$4 sm:$0xff]  }
  0x3b   :  { %527 = vmatpush1.bf16.msra.mxu0 %v901_v3  ;;  %485 = vmatprep.subr.bf16.mxu1 %v902_v4  ;;  %v907_v7 = vld [vmem:[#allocation5 + $0x110] ss:$8 sps:$4 sm:$0xff]   ;;  %v910_v9 = vld [vmem:[#allocation5 + $0x124] ss:$8 sps:$4 sm:$0xff]   ;;  %v912_v10 = vld [vmem:[#allocation5 + $0x20] ss:$8 sps:$4 sm:$0xff]  }
  0x3c   :  { %528 = vmatprep.subr.bf16.mxu0 %v904_v5  ;;  %v913_v11 = vld [vmem:[#allocation5 + $0x120] ss:$8 sps:$4 sm:$0xff]   ;;  %v914_v12 = vld [vmem:[#allocation5 + $0x34] ss:$8 sps:$4 sm:$0xff]   ;;  %v918_v14 = vld [vmem:[#allocation5 + $0x30] ss:$8 sps:$4 sm:$0xff]  }
  0x3d   :  { %v916_v13 = vld [vmem:[#allocation5 + $0x134] ss:$8 sps:$4 sm:$0xff]   ;;  %v919_v15 = vld [vmem:[#allocation5 + $0x130] ss:$8 sps:$4 sm:$0xff]   ;;  %v920_v16 = vld [vmem:[#allocation5 + $0x44] ss:$8 sps:$4 sm:$0xff]  }
  0x3e   :  { %486 = vmatpush1.bf16.msra.mxu1 %v906_v6  ;;  %v922_v17 = vld [vmem:[#allocation5 + $0x144] ss:$8 sps:$4 sm:$0xff]   ;;  %v924_v18 = vld [vmem:[#allocation5 + $0x40] ss:$8 sps:$4 sm:$0xff]   ;;  %v926_v20 = vld [vmem:[#allocation5 + $0x54] ss:$8 sps:$4 sm:$0xff]  }
  0x3f   :  { %529 = vmatpush1.bf16.msra.mxu0 %v907_v7  ;;  %487 = vmatprep.subr.bf16.mxu1 %v908_v8  ;;  %v925_v19 = vld [vmem:[#allocation5 + $0x140] ss:$8 sps:$4 sm:$0xff]   ;;  %v928_v21 = vld [vmem:[#allocation5 + $0x154] ss:$8 sps:$4 sm:$0xff]   ;;  %v930_v22 = vld [vmem:[#allocation5 + $0x50] ss:$8 sps:$4 sm:$0xff]  }
  0x40   :  { %530 = vmatprep.subr.bf16.mxu0 %v910_v9  ;;  %v931_v23 = vld [vmem:[#allocation5 + $0x150] ss:$8 sps:$4 sm:$0xff]   ;;  %v932_v24 = vld [vmem:[#allocation5 + $0x64] ss:$8 sps:$4 sm:$0xff]   ;;  %v936_v26 = vld [vmem:[#allocation5 + $0x60] ss:$8 sps:$4 sm:$0xff]  }
  0x41   :  { %v934_v25 = vld [vmem:[#allocation5 + $0x164] ss:$8 sps:$4 sm:$0xff]   ;;  %v937_v27 = vld [vmem:[#allocation5 + $0x160] ss:$8 sps:$4 sm:$0xff]   ;;  %v938_v28 = vld [vmem:[#allocation5 + $0x74] ss:$8 sps:$4 sm:$0xff]  }
  0x42   :  { %488 = vmatpush1.bf16.msra.mxu1 %v912_v10  ;;  %v940_v29 = vld [vmem:[#allocation5 + $0x174] ss:$8 sps:$4 sm:$0xff]   ;;  %v942_v30 = vld [vmem:[#allocation5 + $0x70] ss:$8 sps:$4 sm:$0xff]   ;;  %v944_v32 = vld [vmem:[#allocation5 + $0x84] ss:$8 sps:$4 sm:$0xff]  }
  0x43   :  { %531 = vmatpush1.bf16.msra.mxu0 %v913_v11  ;;  %489 = vmatprep.subr.bf16.mxu1 %v914_v12  ;;  %v943_v31 = vld [vmem:[#allocation5 + $0x170] ss:$8 sps:$4 sm:$0xff]   ;;  %v946_v33 = vld [vmem:[#allocation5 + $0x184] ss:$8 sps:$4 sm:$0xff]   ;;  %v948_v34 = vld [vmem:[#allocation5 + $0x80] ss:$8 sps:$4 sm:$0xff]  }
  0x44   :  { %532 = vmatprep.subr.bf16.mxu0 %v916_v13  ;;  %v949_v35 = vld [vmem:[#allocation5 + $0x180] ss:$8 sps:$4 sm:$0xff]   ;;  %v950_v36 = vld [vmem:[#allocation5 + $0x94] ss:$8 sps:$4 sm:$0xff]   ;;  %v954_v38 = vld [vmem:[#allocation5 + $0x90] ss:$8 sps:$4 sm:$0xff]  }
  0x45   :  { %v952_v37 = vld [vmem:[#allocation5 + $0x194] ss:$8 sps:$4 sm:$0xff]   ;;  %v955_v39 = vld [vmem:[#allocation5 + $0x190] ss:$8 sps:$4 sm:$0xff]   ;;  %v956_v40 = vld [vmem:[#allocation5 + $0xa4] ss:$8 sps:$4 sm:$0xff]  }
  0x46   :  { %490 = vmatpush1.bf16.msra.mxu1 %v918_v14  ;;  %v958_v41 = vld [vmem:[#allocation5 + $0x1a4] ss:$8 sps:$4 sm:$0xff]   ;;  %v960_v42 = vld [vmem:[#allocation5 + $0xa0] ss:$8 sps:$4 sm:$0xff]   ;;  %v962_v44 = vld [vmem:[#allocation5 + $0xb4] ss:$8 sps:$4 sm:$0xff]  }
  0x47   :  { %533 = vmatpush1.bf16.msra.mxu0 %v919_v15  ;;  %491 = vmatprep.subr.bf16.mxu1 %v920_v16  ;;  %v961_v43 = vld [vmem:[#allocation5 + $0x1a0] ss:$8 sps:$4 sm:$0xff]   ;;  %v964_v45 = vld [vmem:[#allocation5 + $0x1b4] ss:$8 sps:$4 sm:$0xff]   ;;  %v966_v46 = vld [vmem:[#allocation5 + $0xb0] ss:$8 sps:$4 sm:$0xff]  }
  0x48   :  { %534 = vmatprep.subr.bf16.mxu0 %v922_v17  ;;  %v967_v47 = vld [vmem:[#allocation5 + $0x1b0] ss:$8 sps:$4 sm:$0xff]   ;;  %v968_v48 = vld [vmem:[#allocation5 + $0xc4] ss:$8 sps:$4 sm:$0xff]   ;;  %v972_v52 = vld [vmem:[#allocation5 + $0xc0] ss:$8 sps:$4 sm:$0xff]  }
  0x49   :  { %v994_v49 = vld [vmem:[#allocation2 + $0x4] ss:$16 sps:$4 sm:$0xff]   ;;  %v997_v51 = vld [vmem:[#allocation2 + $0xc] ss:$16 sps:$4 sm:$0xff]   ;;  %v973_v53 = vld [vmem:[#allocation5 + $0x1c0] ss:$8 sps:$4 sm:$0xff]  }
  0x4a   :  { %492 = vmatpush1.bf16.msra.mxu1 %v924_v18  ;;  %v970_v50 = vld [vmem:[#allocation5 + $0x1c4] ss:$8 sps:$4 sm:$0xff]   ;;  %515 = vmatprep.mubr.bf16.mxu1 %v994_v49  ;;  %v974_v54 = vld [vmem:[#allocation5 + $0xd4] ss:$8 sps:$4 sm:$0xff]   ;;  %v978_v56 = vld [vmem:[#allocation5 + $0xd0] ss:$8 sps:$4 sm:$0xff]  }
  0x4b   :  { %535 = vmatpush1.bf16.msra.mxu0 %v925_v19  ;;  %493 = vmatprep.subr.bf16.mxu1 %v926_v20  ;;  %v976_v55 = vld [vmem:[#allocation5 + $0x1d4] ss:$8 sps:$4 sm:$0xff]   ;;  %v979_v57 = vld [vmem:[#allocation5 + $0x1d0] ss:$8 sps:$4 sm:$0xff]   ;;  %v980_v58 = vld [vmem:[#allocation5 + $0xe4] ss:$8 sps:$4 sm:$0xff]   ;;  %v133_v20 = vlaneseq }
  0x4c   :  { %536 = vmatprep.subr.bf16.mxu0 %v928_v21  ;;  %558 = vmatprep.mubr.bf16.mxu0 %v997_v51  ;;  %v982_v59 = vld [vmem:[#allocation5 + $0x1e4] ss:$8 sps:$4 sm:$0xff]   ;;  %v984_v60 = vld [vmem:[#allocation5 + $0xe0] ss:$8 sps:$4 sm:$0xff]   ;;  %v986_v62 = vld [vmem:[#allocation5 + $0xf4] ss:$8 sps:$4 sm:$0xff]  }
  0x4d   :  { %v985_v61 = vld [vmem:[#allocation5 + $0x1e0] ss:$8 sps:$4 sm:$0xff]   ;;  %v988_v63 = vld [vmem:[#allocation5 + $0x1f4] ss:$8 sps:$4 sm:$0xff]   ;;  %v990_v0 = vld [vmem:[#allocation5 + $0xf0] ss:$8 sps:$4 sm:$0xff]  }
  0x4e   :  { %494 = vmatpush1.bf16.msra.mxu1 %v930_v22  ;;  %v991_v1 = vld [vmem:[#allocation5 + $0x1f0] ss:$8 sps:$4 sm:$0xff]   ;;  %v998_v2 = vld [vmem:[#allocation7 + $0x40] sm:$0xff]   ;;  %v1000_v6 = vld [vmem:[#allocation7 + $0x48] sm:$0xff]   ;;  %v134_v21 = vshrl.u32 %v133_v20, 7  ;;  %s1117_s12 = smov [#allocation8]  }
  0x4f   :  { %537 = vmatpush1.bf16.msra.mxu0 %v931_v23  ;;  %495 = vmatprep.subr.bf16.mxu1 %v932_v24  ;;  %v992_v3 = vld [vmem:[#allocation2] ss:$16 sps:$4 sm:$0xff]   ;;  %v995_v4 = vld [vmem:[#allocation2 + $0x8] ss:$16 sps:$4 sm:$0xff]   ;;  %s758_s13 = sshll.u32 %s1117_s12, 4  ;;  %s759_s13 = int_to_ptr.vmem [resolvable:$true] %s758_s13 }
  0x50   :  { %538 = vmatprep.subr.bf16.mxu0 %v934_v25  ;;  %v999_v5 = vld [vmem:[#allocation7] sm:$0xff]   ;;  %v1001_v7 = vld [vmem:[#allocation7 + $0x8] sm:$0xff]   ;;  %v1002_v8 = vld [vmem:[#allocation7 + $0x50] sm:$0xff]   ;;  %v135_v22 = vsub.s32 0, %v134_v21  ;;  %v139_v24 = vsub.s32 1, %v134_v21  ;;  %s1080_s14 = scalar_lea.vmem %s759_s13, 256  ;;  %p1085_p11 = scmp.lt.s32.totalorder %s759_s13, %s759_s13 }
  0x51   :  { %v1003_v9 = vld [vmem:[#allocation7 + $0x10] sm:$0xff]   ;;  %v1004_v10 = vld [vmem:[#allocation7 + $0x58] sm:$0xff]   ;;  %v1006_v12 = vld [vmem:[#allocation7 + $0x60] sm:$0xff]   ;;  %p1081_p10 = scmp.ne.s32.totalorder %s759_s13, %s1080_s14  ;;  %p1086_p12 = scmp.lt.s32.totalorder %s1080_s14, %s1080_s14 }
  0x52   :  { %496 = vmatpush1.bf16.msra.mxu1 %v936_v26  ;;  %v1005_v11 = vld [vmem:[#allocation7 + $0x18] sm:$0xff]   ;;  %v1007_v13 = vld [vmem:[#allocation7 + $0x20] sm:$0xff]   ;;  %v1008_v14 = vld [vmem:[#allocation7 + $0x68] sm:$0xff]  }
  0x53   :  { %539 = vmatpush1.bf16.msra.mxu0 %v937_v27  ;;  %497 = vmatprep.subr.bf16.mxu1 %v938_v28  ;;  %v1009_v15 = vld [vmem:[#allocation7 + $0x28] sm:$0xff]   ;;  %v1010_v16 = vld [vmem:[#allocation7 + $0x70] sm:$0xff]   ;;  %v1012_v18 = vld [vmem:[#allocation7 + $0x78] sm:$0xff]   ;;  %p1087_p13 = por %p1086_p12, %p1085_p11 }
  0x54   :  { %540 = vmatprep.subr.bf16.mxu0 %v940_v29  ;;  %v1011_v17 = vld [vmem:[#allocation7 + $0x30] sm:$0xff]   ;;  %v1013_v19 = vld [vmem:[#allocation7 + $0x38] sm:$0xff]   ;;  %v131_v23 = vld [vmem:[%s1210_s2] sm:$0x3] }
  0x55   :  { %v136_v25 = vrot.slane %v131_v23, %v135_v22  ;;  %v140_v26 = vrot.slane %v131_v23, %v139_v24  ;;  %p1088_p0 = pnand %p1087_p13, %p1081_p10 }
  0x56   :  { %498 = vmatpush1.bf16.msra.mxu1 %v942_v30 }
  0x57   :  { %541 = vmatpush1.bf16.msra.mxu0 %v943_v31  ;;  %499 = vmatprep.subr.bf16.mxu1 %v944_v32 }
  0x58   :  { %542 = vmatprep.subr.bf16.mxu0 %v946_v33 }
  0x5a   :  { %500 = vmatpush1.bf16.msra.mxu1 %v948_v34 }
  0x5b   :  { %543 = vmatpush1.bf16.msra.mxu0 %v949_v35  ;;  %501 = vmatprep.subr.bf16.mxu1 %v950_v36 }
  0x5c   :  { %544 = vmatprep.subr.bf16.mxu0 %v952_v37 }
  0x5e   :  { %502 = vmatpush1.bf16.msra.mxu1 %v954_v38 }
  0x5f   :  { %545 = vmatpush1.bf16.msra.mxu0 %v955_v39  ;;  %503 = vmatprep.subr.bf16.mxu1 %v956_v40 }
  0x60   :  { %546 = vmatprep.subr.bf16.mxu0 %v958_v41 }
  0x62   :  { %504 = vmatpush1.bf16.msra.mxu1 %v960_v42 }
  0x63   :  { %547 = vmatpush1.bf16.msra.mxu0 %v961_v43  ;;  %505 = vmatprep.subr.bf16.mxu1 %v962_v44 }
  0x64   :  { %548 = vmatprep.subr.bf16.mxu0 %v964_v45 }
  0x66   :  { %506 = vmatpush1.bf16.msra.mxu1 %v966_v46 }
  0x67   :  { %549 = vmatpush1.bf16.msra.mxu0 %v967_v47  ;;  %507 = vmatprep.subr.bf16.mxu1 %v968_v48 }
  0x68   :  { %550 = vmatprep.subr.bf16.mxu0 %v970_v50  ;;  %v839_v50 = vld [vmem:[%s1212_s4] ss:$0 sm:$0xff] }
  0x6a   :  { %508 = vmatpush1.bf16.msra.mxu1 %v972_v52 }
  0x6b   :  { %551 = vmatpush1.bf16.msra.mxu0 %v973_v53  ;;  %509 = vmatprep.subr.bf16.mxu1 %v974_v54 }
  0x6c   :  { %552 = vmatprep.subr.bf16.mxu0 %v976_v55 }
  0x6e   :  { %510 = vmatpush1.bf16.msra.mxu1 %v978_v56 }
  0x6f   :  { %553 = vmatpush1.bf16.msra.mxu0 %v979_v57  ;;  %511 = vmatprep.subr.bf16.mxu1 %v980_v58 }
  0x70   :  { %554 = vmatprep.subr.bf16.mxu0 %v982_v59 }
  0x72   :  { %512 = vmatpush1.bf16.msra.mxu1 %v984_v60 }
  0x73   :  { %555 = vmatpush1.bf16.msra.mxu0 %v985_v61  ;;  %513 = vmatprep.subr.bf16.mxu1 %v986_v62 }
  0x74   :  { %556 = vmatprep.subr.bf16.mxu0 %v988_v63 }
  0x76   :  { %514 = vmatpush1.bf16.msra.mxu1 %v990_v0 }
  0x77   :  { %557 = vmatpush1.bf16.msra.mxu0 %v991_v1  ;;  %856 = vmatprep.subr.bf16.mxu1 %v998_v2 }
  0x79   :  { %516 = vmatmul.mubr.bf16.vlgmr.msra.gmra.mrb[0].mxu1 %v992_v3 }
  0x7a   :  { %559 = vmatmul.mubr.bf16.vlgmr.msra.gmra.mrb[0].mxu0 %v995_v4  ;;  %857 = vmatpush3.bf16.msra.mxu1 %v999_v5 }
  0x7b   :  { %858 = vmatprep.subr.bf16.mxu1 %v1000_v6 }
  0x7e   :  { %859 = vmatpush3.bf16.msra.mxu1 %v1001_v7 }
  0x7f   :  { %860 = vmatprep.subr.bf16.mxu1 %v1002_v8 }
  0x82   :  { %861 = vmatpush3.bf16.msra.mxu1 %v1003_v9 }
  0x83   :  { %862 = vmatprep.subr.bf16.mxu1 %v1004_v10 }
  0x86   :  { %863 = vmatpush3.bf16.msra.mxu1 %v1005_v11 }
  0x87   :  { %864 = vmatprep.subr.bf16.mxu1 %v1006_v12 }
  0x8a   :  { %865 = vmatpush3.bf16.msra.mxu1 %v1007_v13 }
  0x8b   :  { %866 = vmatprep.subr.bf16.mxu1 %v1008_v14 }
  0x8e   :  { %867 = vmatpush3.bf16.msra.mxu1 %v1009_v15 }
  0x8f   :  { %868 = vmatprep.subr.bf16.mxu1 %v1010_v16 }
  0x92   :  { %869 = vmatpush3.bf16.msra.mxu1 %v1011_v17 }
  0x93   :  { %870 = vmatprep.subr.bf16.mxu1 %v1012_v18 }
  0x96   :  { %871 = vmatpush3.bf16.msra.mxu1 %v1013_v19 }
 0x14c   :  { %v517_v27 = vpop.f32.mrb[0].mxu1 }
 0x14d   :  { %v560_v28 = vpop.f32.mrb[0].mxu0  ;;  %v518_v29 = vadd.f32 %v517_v27, %v136_v25  ;;  %v519_v30 = vpop.f32.mrb[1].mxu1 }
 0x14e   :  { %v562_v31 = vpop.f32.mrb[1].mxu0  ;;  %v520_v32 = vadd.f32 %v519_v30, %v140_v26  ;;  %v521_v33 = vpop.f32.mrb[2].mxu1 }
 0x14f   :  { %v564_v34 = vpop.f32.mrb[2].mxu0  ;;  %v561_v35 = vadd.f32 %v560_v28, %v518_v29  ;;  %v522_v36 = vadd.f32 %v521_v33, %v136_v25  ;;  %v523_v37 = vpop.f32.mrb[3].mxu1 }
 0x150   :  { %v566_v38 = vpop.f32.mrb[3].mxu0  ;;  %v563_v39 = vadd.f32 %v562_v31, %v520_v32  ;;  %v524_v40 = vadd.f32 %v523_v37, %v140_v26 }
 0x151   :  { %v565_v41 = vadd.f32 %v564_v34, %v522_v36  ;;  %v569_v43 = vmax.f32 %v561_v35, 0.0 }
 0x152   :  { %v567_v42 = vadd.f32 %v566_v38, %v524_v40  ;;  %v570_v45 = vmax.f32 %v563_v39, 0.0 }
 0x153   :  { %v571_v44 = vmax.f32 %v565_v41, 0.0 }
 0x154   :  { %v572_v46 = vmax.f32 %v567_v42, 0.0 }
 0x155   :  { %v573_v47 = vpack.c.bf16 %v571_v44, %v569_v43 }
 0x156   :  { %v574_v48 = vpack.c.bf16 %v572_v46, %v570_v45 }
 0x158   :  { %742 = vmatprep.mubr.bf16.mxu1 %v574_v48 }
 0x159   :  { %743 = vmatmul.mubr.bf16.vlgmr.msra.gmra.mrb[4].mxu1 %v573_v47 }
 0x22c   :  { %v872_v49 = vpop.f32.mrb[4].mxu1 }
 0x22d   :  { %v873_v51 = vpop.f32.mrb[5].mxu1 }
 0x22e   :  { %v874_v52 = vadd.f32 %v873_v51, %v872_v49  ;;  %v875_v53 = vpop.f32.mrb[6].mxu1 }
 0x22f   :  { %v876_v54 = vpop.f32.mrb[7].mxu1 }
 0x230   :  { %v745_v55 = vadd.f32 %v874_v52, %v839_v50  ;;  %v877_v56 = vadd.f32 %v876_v54, %v875_v53 }
 0x232   :  { %751 = vst [vmem:[#allocation8] sm:$0xff] %v745_v55  ;;  %v748_v57 = vadd.f32 %v877_v56, %v839_v50 }
 0x234   :  { %752 = vst [vmem:[#allocation8 + $0x8] sm:$0xff] %v748_v57 }
 0x235   :  { %1091 = shalt.err (!%p1088_p0)
}
 0x236   :  { %s1092_s16 = scalar_lea.hbm %s1213_s5, 256 }
 0x237   :  { %p1093_p1 = scmp.ne.s32.totalorder %s1213_s5, %s1092_s16  ;;  %p1096_p2 = scmp.lt.u32.totalorder %s1092_s16, %s1213_s5 }
 0x239   :  { %p1098_p3 = pnand %p1096_p2, %p1093_p1 }
 0x23b   :  { %1101 = shalt.err (!%p1098_p3)
}
 0x23c   :  { %764 = dma.vmem_to_hbm [thread:$0]  %s759_s13, 256, %s1213_s5, [#allocation4], %s1109_s28, %s1109_s28, %s1110_s29  }
 0x23d   :  { %1106 = dma.done.wait [#allocation4], 256  }
 0x23e   :  { %1107 = vsyncadd [#allocation4], 4294967040 }
 0x23f   :  { %768 = vsyncpa [#allocation3], 1 }
 0x240   :  { %769 = vsyncpa [#allocation6], 1 }
 0x241   :  { %770 = vsyncpa [#allocation4], 1 }

</bundles_post_ra>
